<compile_context>
chip_gen: v5e
topology: v5e:2x2
jax: 0.10.0
libtpu: 0.0.40
codegen_flags: <defaults>
</compile_context>

<pallas_src>
import functools

import jax
import jax.numpy as jnp
from jax.experimental import pallas as pl
from jax.experimental.pallas import tpu as pltpu

N_EMBD = 384          # n_embd in the PyTorch module
BLOCK_SIZE = 256      # max sequence length (causal-mask buffer size)
HEAD_SIZE = 64        # head_size passed to Head(); n_embd // n_heads in v2.py
NEG_INF = -1e30


def _use_bf16_exp():
    """bf16 EUP exists on v6e / v7x; keep f32 exp on v5e / unknown chips."""
    try:
        kind = jax.devices()[0].device_kind.lower()
    except Exception:
        return False
    return any(tag in kind for tag in ("v6", "v7", "7x"))


def head_kernel(x_ref, wqkv_ref, bias_ref, o_ref, *, hs, exp_dtype):
    # One grid step processes Bb batch elements: x block is (Bb, T, C).
    Bb, T, C = x_ref.shape
    HSP = wqkv_ref.shape[1] // 3          # lane-padded head size (128)

    # ---- fused QKV projection: bf16 MXU inputs, f32 accumulation ----
    x2d = x_ref[...].reshape(Bb * T, C)
    if x2d.dtype != jnp.bfloat16:         # no-op if upstream already emits bf16
        x2d = x2d.astype(jnp.bfloat16)
    qkv = jnp.dot(x2d, wqkv_ref[...],
                  preferred_element_type=jnp.float32)       # (Bb*T, 3*HSP)

    # 1/sqrt(d) with d = real head size (k.shape[-1] in PyTorch), applied to q
    # once rather than to the (T,T) score matrix.  Slices below are 128-wide
    # and start on 128-lane boundaries (no mid-vreg relayout).
    scale = hs ** (-0.5)
    q = (qkv[:, 0:HSP] * scale).reshape(Bb, T, HSP).astype(jnp.bfloat16)
    k = qkv[:, HSP:2 * HSP].reshape(Bb, T, HSP).astype(jnp.bfloat16)
    v = qkv[:, 2 * HSP:3 * HSP].reshape(Bb, T, HSP).astype(jnp.bfloat16)

    # ---- batched attention scores (Bb, T, T), f32, + additive causal bias ----
    s = jnp.einsum("bqd,bkd->bqk", q, k, preferred_element_type=jnp.float32)
    s = s + bias_ref[...]                                   # (T,T) bcast over Bb

    # numerically-stable softmax; diagonal is never masked so the max is finite
    m = jnp.max(s, axis=-1, keepdims=True)
    p = jnp.exp((s - m).astype(exp_dtype))                  # unnormalized probs
    denom = jnp.sum(p, axis=-1, keepdims=True, dtype=jnp.float32)  # f32 row sum

    # dropout(p=0.2) on the attention weights -> identity at inference

    # PV matmul first, then normalize the small (Bb, T, HSP) output with the
    # EUP approximate reciprocal (separate bundle slot -> ~free).
    o = jnp.einsum("bqk,bkd->bqd", p.astype(jnp.bfloat16), v,
                   preferred_element_type=jnp.float32)
    o = o * pl.reciprocal(denom, approx=True)
    o_ref[...] = o.astype(o_ref.dtype)                      # lane-dense (…,128)


def _pick_block_batch(B, T, target_rows=2048):
    """Largest divisor Bb of B with Bb*T <= target_rows; keep >= 2 grid steps
    whenever B >= 2 so v7x's two TensorCores both get work."""
    limit = B if B < 2 else max(1, B // 2)
    best = 1
    for cand in range(1, limit + 1):
        if B % cand == 0 and cand * T <= max(target_rows, T):
            best = cand
    return best


def head_forward(x, wq, wk, wv, *, target_rows=2048):
    """x: (B, T, C) f32 or bf16.  wq/wk/wv: (C, head_size), stored (in, out)."""
    B, T, C = x.shape
    HS = wq.shape[1]
    assert C == N_EMBD and T <= BLOCK_SIZE

    # Lane-aligned padded head size (HS=64 -> 128): zero columns contribute
    # nothing to q.k^T and produce zero high lanes in p@v, and they make both
    # the qkv slices and the output store 128-lane dense.
    HSP = max(128, pl.cdiv(HS, 128) * 128)

    def _pad(w):
        return jnp.pad(w, ((0, 0), (0, HSP - HS)))

    # Fused, padded, bf16 weight; resident across the whole grid.
    wqkv = jnp.concatenate([_pad(wq), _pad(wk), _pad(wv)],
                           axis=1).astype(jnp.bfloat16)      # (C, 3*HSP)

    # Precomputed additive causal bias (0 on/below diagonal, -1e30 above).
    row = jnp.arange(T, dtype=jnp.int32)[:, None]
    col = jnp.arange(T, dtype=jnp.int32)[None, :]
    bias = jnp.where(row >= col, 0.0, NEG_INF).astype(jnp.float32)   # (T, T)

    Bb = _pick_block_batch(B, T, target_rows)
    grid = (B // Bb,)

    flops = 2 * B * T * C * (3 * HSP) + 4 * B * T * T * HSP
    bytes_accessed = (x.size * x.dtype.itemsize
                      + wqkv.size * 2 + bias.size * 4 + B * T * HSP * 4)
    cost = pl.CostEstimate(flops=flops, transcendentals=B * T * T,
                           bytes_accessed=bytes_accessed)

    kernel = functools.partial(
        head_kernel, hs=HS,
        exp_dtype=jnp.bfloat16 if _use_bf16_exp() else jnp.float32)

    out = pl.pallas_call(
        kernel,
        out_shape=jax.ShapeDtypeStruct((B, T, HSP), jnp.float32),
        grid_spec=pltpu.PrefetchScalarGridSpec(
            num_scalar_prefetch=0,
            grid=grid,
            in_specs=[
                pl.BlockSpec((Bb, T, C), lambda b: (b, 0, 0)),
                pl.BlockSpec((C, 3 * HSP), lambda b: (0, 0)),   # resident weight
                pl.BlockSpec((T, T), lambda b: (0, 0)),         # resident bias
            ],
            out_specs=pl.BlockSpec((Bb, T, HSP), lambda b: (b, 0, 0)),
        ),
        compiler_params=pltpu.CompilerParams(
            # batch blocks are independent -> shard across v7x's 2 TensorCores
            dimension_semantics=("parallel",),
            # over v5e/v6e scoped defaults, under v7x's 64 MiB physical VMEM
            vmem_limit_bytes=48 * 1024 * 1024,
        ),
        cost_estimate=cost,
    )(x, wqkv, bias)

    # Drop the zero-padded lanes (tiny XLA slice on a small output).
    return out[..., :HS]


def reference_head(x, wq, wk, wv):
    """Pure-JAX f32 reference matching the PyTorch Head.forward (eval mode)."""
    B, T, C = x.shape
    HS = wq.shape[1]
    q = x @ wq
    k = x @ wk
    v = x @ wv
    wei = jnp.einsum("btd,bsd->bts", q, k) * HS ** (-0.5)
    mask = jnp.tril(jnp.ones((T, T), bool))
    wei = jnp.where(mask, wei, -jnp.inf)
    wei = jax.nn.softmax(wei, axis=-1)
    return jnp.einsum("bts,bsd->btd", wei, v)


if __name__ == "__main__":
    key = jax.random.PRNGKey(0)
    kx, kq, kk, kv = jax.random.split(key, 4)

    B, T = 2, 32                       # small shapes; C fixed at n_embd=384
    x = jax.random.normal(kx, (B, T, N_EMBD), jnp.float32)
    sc = 0.02
    wq = sc * jax.random.normal(kq, (N_EMBD, HEAD_SIZE), jnp.float32)
    wk = sc * jax.random.normal(kk, (N_EMBD, HEAD_SIZE), jnp.float32)
    wv = sc * jax.random.normal(kv, (N_EMBD, HEAD_SIZE), jnp.float32)

    out = jax.block_until_ready(head_forward(x, wq, wk, wv))
    ref = reference_head(x, wq, wk, wv)

    assert out.shape == (B, T, HEAD_SIZE)
    max_err = float(jnp.max(jnp.abs(out - ref)))
    # bf16 MXU inputs (+ bf16 exp on v6e/v7x) + approx reciprocal -> loosened
    # tolerance vs the f32 reference; inference-quality numerics.
    assert jnp.allclose(out, ref, rtol=2e-2, atol=2e-2), max_err

    print("KERNEL_OK")
</pallas_src>

<mosaic_0001>
module attributes {stable_mosaic.version = 11 : i64} {
  func.func @head_kernel(%arg0: i32, %arg1: memref<1x32x384xf32, #tpu.memory_space<vmem>>, %arg2: memref<384x384xbf16, #tpu.memory_space<vmem>>, %arg3: memref<32x32xf32, #tpu.memory_space<vmem>>, %arg4: memref<1x32x128xf32, #tpu.memory_space<vmem>>) attributes {dimension_semantics = [#tpu.dimension_semantics<parallel>], iteration_bounds = array<i64: 2>, scalar_prefetch = 0 : i64, scratch_operands = 0 : i64, tpu.core_type = #tpu.core_type<tc>, window_params = [{transform_indices = @transform_0, window_bounds = array<i64: 1, 32, 384>}, {pipeline_mode = #tpu.pipeline_mode<synchronous>, transform_indices = @transform_1, window_bounds = array<i64: 384, 384>}, {pipeline_mode = #tpu.pipeline_mode<synchronous>, transform_indices = @transform_2, window_bounds = array<i64: 32, 32>}, {transform_indices = @transform_3, window_bounds = array<i64: 1, 32, 128>}]} {
    %c0 = arith.constant 0 : index
    %c0_0 = arith.constant 0 : index
    %c0_1 = arith.constant 0 : index
    %0 = vector.load %arg1[%c0, %c0_0, %c0_1] : memref<1x32x384xf32, #tpu.memory_space<vmem>>, vector<1x32x384xf32>
    %1 = vector.shape_cast %0 : vector<1x32x384xf32> to vector<32x384xf32>
    %2 = arith.truncf %1 : vector<32x384xf32> to vector<32x384xbf16>
    %c0_2 = arith.constant 0 : index
    %c0_3 = arith.constant 0 : index
    %3 = vector.load %arg2[%c0_2, %c0_3] : memref<384x384xbf16, #tpu.memory_space<vmem>>, vector<384x384xbf16>
    %cst = arith.constant dense<0.000000e+00> : vector<32x384xf32>
    %4 = tpu.matmul %2, %3, %cst {dimension_numbers = #tpu.dot_dimension_numbers<[1], [0], [0], [1], [0, 0, 1, 1], [], []>} : vector<32x384xbf16>, vector<384x384xbf16>, vector<32x384xf32> -> vector<32x384xf32>
    %5 = vector.extract_strided_slice %4 {offsets = [0, 0], sizes = [32, 128], strides = [1, 1]} : vector<32x384xf32> to vector<32x128xf32>
    %cst_4 = arith.constant 1.250000e-01 : f32
    %6 = vector.broadcast %cst_4 : f32 to vector<32x128xf32>
    %7 = arith.mulf %5, %6 : vector<32x128xf32>
    %8 = vector.shape_cast %7 : vector<32x128xf32> to vector<1x32x128xf32>
    %9 = arith.truncf %8 : vector<1x32x128xf32> to vector<1x32x128xbf16>
    %10 = vector.extract_strided_slice %4 {offsets = [0, 128], sizes = [32, 128], strides = [1, 1]} : vector<32x384xf32> to vector<32x128xf32>
    %11 = vector.shape_cast %10 : vector<32x128xf32> to vector<1x32x128xf32>
    %12 = arith.truncf %11 : vector<1x32x128xf32> to vector<1x32x128xbf16>
    %13 = vector.extract_strided_slice %4 {offsets = [0, 256], sizes = [32, 128], strides = [1, 1]} : vector<32x384xf32> to vector<32x128xf32>
    %14 = vector.shape_cast %13 : vector<32x128xf32> to vector<1x32x128xf32>
    %15 = arith.truncf %14 : vector<1x32x128xf32> to vector<1x32x128xbf16>
    "tpu.trace_start"() <{level = 10 : i32, message = "bqd,bkd->bqk"}> : () -> ()
    %cst_5 = arith.constant dense<0.000000e+00> : vector<1x32x32xf32>
    %16 = tpu.matmul %9, %12, %cst_5 {dimension_numbers = #tpu.dot_dimension_numbers<[2], [2], [1], [1], [0, 0, 0, 1, 1, 1], [0], [0]>} : vector<1x32x128xbf16>, vector<1x32x128xbf16>, vector<1x32x32xf32> -> vector<1x32x32xf32>
    "tpu.trace_stop"() : () -> ()
    %c0_6 = arith.constant 0 : index
    %c0_7 = arith.constant 0 : index
    %17 = vector.load %arg3[%c0_6, %c0_7] : memref<32x32xf32, #tpu.memory_space<vmem>>, vector<32x32xf32>
    %18 = vector.shape_cast %17 : vector<32x32xf32> to vector<1x32x32xf32>
    %19 = arith.addf %16, %18 : vector<1x32x32xf32>
    %cst_8 = arith.constant dense<0xFF800000> : vector<1x32xf32>
    %20 = vector.multi_reduction <maximumf>, %19, %cst_8 [2] : vector<1x32x32xf32> to vector<1x32xf32>
    %21 = vector.shape_cast %20 : vector<1x32xf32> to vector<1x32x1xf32>
    %22 = vector.broadcast %21 : vector<1x32x1xf32> to vector<1x32x32xf32>
    %23 = arith.subf %19, %22 : vector<1x32x32xf32>
    %24 = math.exp %23 : vector<1x32x32xf32>
    %cst_9 = arith.constant dense<0.000000e+00> : vector<1x32xf32>
    %25 = vector.multi_reduction <add>, %24, %cst_9 [2] : vector<1x32x32xf32> to vector<1x32xf32>
    %26 = vector.shape_cast %25 : vector<1x32xf32> to vector<1x32x1xf32>
    %27 = arith.truncf %24 : vector<1x32x32xf32> to vector<1x32x32xbf16>
    "tpu.trace_start"() <{level = 10 : i32, message = "bqk,bkd->bqd"}> : () -> ()
    %cst_10 = arith.constant dense<0.000000e+00> : vector<1x32x128xf32>
    %28 = tpu.matmul %27, %15, %cst_10 {dimension_numbers = #tpu.dot_dimension_numbers<[2], [1], [1], [2], [0, 0, 0, 1, 1, 2], [0], [0]>} : vector<1x32x32xbf16>, vector<1x32x128xbf16>, vector<1x32x128xf32> -> vector<1x32x128xf32>
    "tpu.trace_stop"() : () -> ()
    %29 = tpu.reciprocal %26 {approx = true} : vector<1x32x1xf32> -> vector<1x32x1xf32>
    %30 = vector.broadcast %29 : vector<1x32x1xf32> to vector<1x32x128xf32>
    %31 = arith.mulf %28, %30 : vector<1x32x128xf32>
    %c0_11 = arith.constant 0 : index
    %c0_12 = arith.constant 0 : index
    %c0_13 = arith.constant 0 : index
    %32 = vector.load %arg4[%c0_11, %c0_12, %c0_13] : memref<1x32x128xf32, #tpu.memory_space<vmem>>, vector<1x32x128xf32>
    tpu.vector_store %arg4[%c0_11, %c0_12, %c0_13], %31 {strides = array<i32>} : memref<1x32x128xf32, #tpu.memory_space<vmem>>, vector<1x32x128xf32>,
    return
  }
  func.func @transform_0(%arg0: i32) -> (i32, i32, i32) {
    %c0_i32 = arith.constant 0 : i32
    %c0_i32_0 = arith.constant 0 : i32
    %c0_i32_1 = arith.constant 0 : i32
    return %arg0, %c0_i32, %c0_i32_0 : i32, i32, i32
  }
  func.func @transform_1(%arg0: i32) -> (i32, i32) {
    %c0_i32 = arith.constant 0 : i32
    %c0_i32_0 = arith.constant 0 : i32
    %c0_i32_1 = arith.constant 0 : i32
    return %c0_i32, %c0_i32_0 : i32, i32
  }
  func.func @transform_2(%arg0: i32) -> (i32, i32) {
    %c0_i32 = arith.constant 0 : i32
    %c0_i32_0 = arith.constant 0 : i32
    %c0_i32_1 = arith.constant 0 : i32
    return %c0_i32, %c0_i32_0 : i32, i32
  }
  func.func @transform_3(%arg0: i32) -> (i32, i32, i32) {
    %c0_i32 = arith.constant 0 : i32
    %c0_i32_0 = arith.constant 0 : i32
    %c0_i32_1 = arith.constant 0 : i32
    return %arg0, %c0_i32, %c0_i32_0 : i32, i32, i32
  }
}

</mosaic_0001>

<bundles_post_ra>
// kernel: tpu_custom_call.1
= control target key start
LH: loop header
LB: loop body
LE: loop exit
PB: predicated region body
PF: predicated region fallthrough
CT: control target
= control target key end

     0   :  { %8 = vsyncpa [#allocation3], 0  ;;  %s2042_s0 = inlined_call_operand.hbm [shape: f32[2,32,384], index: 0, kind: input, shape index: {}]   ;;  %s2043_s1 = inlined_call_operand.hbm [shape: bf16[384,384], index: 1, kind: input, shape index: {}]   ;;  %s2044_s2 = inlined_call_operand.hbm [shape: f32[32,32], index: 2, kind: input, shape index: {}]   ;;  %s2045_s3 = inlined_call_operand.hbm [shape: f32[2,32,128], index: 3, kind: output, shape index: {}]  }
   0x1   :  { %10 = vsyncpa [#allocation3 + $0x1], 0 }
   0x2   :  { %11 = vsyncpa [#allocation6], 0 }
   0x3   :  { %12 = vsyncpa [#allocation4], 0 }
   0x4   :  { %14 = vsyncpa [#allocation4 + $0x1], 0  ;;  %s1837_s12 = smov 0   ;;  %s1839_s13 = smov 0  }
   0x5   :  { %s1841_s14 = smov 0   ;;  %s1843_s15 = smov 0  }
   0x6 LB: > { %s1858_s16 = sadd.s32 4294967295, %s1805_s15   ;;  %s1165_s17 = sadd.s32 4294967294, %s1805_s15   ;;  %s1805_s15 = sphi %s1843_s15, %s2055_s15   ;;  %s1801_s14 = sphi %s1841_s14, %s2054_s14   ;;  %s1797_s13 = sphi %s1839_s13, %s2053_s13   ;;  %s1793_s12 = sphi %s1837_s12, %s2052_s12  }
   0x7   : > { %p40_p0 = scmp.ne.s32.totalorder %s1797_s13, %s1793_s12  ;;  %p41_p1 = scmp.eq.s32.totalorder %s1858_s16, 0 }
   0x8   : > { %p106_p2 = scmp.eq.s32.totalorder %s1858_s16, 1  ;;  %p112_p3 = scmp.eq.s32.totalorder %s1165_s17, 1 }
   0x9   : > { %p1867_p4 = por %p41_p1, %p40_p0  ;;  %p1166_p5 = scmp.ge.s32.totalorder %s1805_s15, 1 }
   0xa   : > { %p1872_p6 = por %p112_p3, %p40_p0  ;;  %p119_p7 = scmp.lt.s32.totalorder %s1805_s15, 3 }
   0xb   : > { %s130_s22 = sshll.u32 %s2043_s1, 4  ;;  %s1807_s24 = smov [#allocation5]   ;;  %s131_s22 = int_to_ptr.hbm [resolvable:$true] %s130_s22 }
   0xc   : > { %p1880_p8 = pnand %p1166_p5, %p119_p7  ;;  %s132_s25 = sshll.u32 %s1807_s24, 4  ;;  %s133_s25 = int_to_ptr.vmem [resolvable:$true] %s132_s25 }
   0xd   : > { %s144_s28 = sshll.u32 %s2044_s2, 4  ;;  %s1808_s29 = smov 192   ;;  %s145_s28 = int_to_ptr.hbm [resolvable:$true] %s144_s28 }
   0xe   : > { %p1566_p9 = pneg %p1880_p8  ;;  %s1809_s30 = smov 12  }
   0xf   : > { %s1810_s4 = smov [#allocation7]   ;;  %s1811_s6 = smov 128  }
  0x10   : > { %p1567_p10 = pnand %p1566_p9, %p41_p1  ;;  %s146_s5 = sshll.u32 %s1810_s4, 4  ;;  %s147_s5 = int_to_ptr.vmem [resolvable:$true] %s146_s5 }
  0x11   : > { %s1812_s7 = smov 8   ;;  %s1893_s8 = sadd.s32 1, %s1805_s15  }
  0x12   : > { %1569 = dma.hbm_to_vmem [thread:$0]  (!%p1567_p10), %s131_s22, 9216, %s133_s25, [#allocation6], %s1808_s29, %s1808_s29, %s1809_s30  }
  0x13   : > { %1572 = dma.hbm_to_vmem [thread:$0]  (!%p1567_p10), %s145_s28, 512, %s147_s5, [#allocation6], %s1811_s6, %s1811_s6, %s1812_s7  }
  0x14   : > { %s24_s9 = ssub.s32 %s1805_s15, %s1893_s8  ;;  %s27_s10 = sadd.s32 1, %s1801_s14 }
  0x15   : > { %p25_p12 = scmp.eq.s32.totalorder %s24_s9, 0  ;;  %p34_p13 = scmp.ne.s32.totalorder %s1801_s14, %s1797_s13 }
  0x16   : > { %p35_p0 = scmp.eq.s32.totalorder %s1805_s15, 0  ;;  %p1583_p7 = scmp.lt.s32.totalorder %s1805_s15, 2 }
  0x17   : > { %s1902_s11 = scalar_select %p25_p12, %s1801_s14, %s27_s10  }
  0x18   : > { %p36_p3 = por %p35_p0, %p34_p13  ;;  %p1906_p5 = por %p106_p2, %p34_p13 }
  0x19   : > { %s160_s20 = sand.u32 1, %s1801_s14   ;;  %s1552_s22 = smul.u32 96, %s1805_s15 }
  0x1a   : > { %s1551_s21 = smul.u32 96, %s160_s20  ;;  %p1913_p9 = pnand %p1583_p7, %p36_p3 }
  0x1b   : > { %s169_s27 = scalar_lea.hbm %s2042_s0, %s1552_s22  ;;  %s161_s4 = scalar_lea.sflag [#allocation3], %s160_s20 }
  0x1c   : > { %s164_s28 = scalar_lea.vmem [#allocation2], %s1551_s21  ;;  %s170_s30 = sshll.u32 %s169_s27, 4  ;;  %s171_s30 = int_to_ptr.hbm [resolvable:$true] %s170_s30 }
  0x1d   : > { %s172_s29 = sshll.u32 %s164_s28, 4  ;;  %s1705_s5 = sshra.s32 %s171_s30, 4  ;;  %s173_s29 = int_to_ptr.vmem [resolvable:$true] %s172_s29  ;;  %s1706_s5 = int_to_ptr.hbm [resolvable:$true] %s1705_s5 }
  0x1e   : > { %s1707_s6 = scalar_lea.hbm %s1706_s5, 96  ;;  %p1709_p10 = pneg %p1913_p9 }
  0x1f   : > { %p1708_p2 = scmp.ne.s32.totalorder %s1706_s5, %s1707_s6  ;;  %s1712_s10 = scalar_lea.hbm %s2042_s0, 192 }
  0x20   : > { %p1713_p0 = scmp.lt.s32.totalorder %s1706_s5, %s2042_s0  ;;  %p1714_p3 = scmp.lt.s32.totalorder %s1712_s10, %s1707_s6 }
  0x21   : > { %p1710_p12 = pnand %p1709_p10, %p1708_p2 }
  0x22   : > { %p1715_p7 = por %p1714_p3, %p1713_p0 }
  0x23   : > { %p1711_p13 = pneg %p1710_p12 }
  0x25   : > { %p1716_p11 = pnand %p1715_p7, %p1711_p13 }
  0x27   : > { %1719 = shalt.err (!%p1716_p11)
}
  0x28   : > { %s1813_s20 = smov 384   ;;  %s1814_s21 = smov 24  }
  0x29   : > { %1576 = dma.hbm_to_vmem [thread:$0]  (!%p1913_p9), %s171_s30, 1536, %s173_s29, %s161_s4, %s1813_s20, %s1813_s20, %s1814_s21  }
  0x2a   : > { %184 = sbr.rel (%p1880_p8) target bundleno = 723 (0x2d3), region = 32  ;;  %s1933_s26 = sand.u32 (!%p1880_p8), 1, %s1797_s13  }
  0x2b   : > { %s1553_s27 = smul.u32 (!%p1880_p8), 96, %s1933_s26  ;;  %s187_s28 = scalar_lea.sflag (!%p1880_p8), [#allocation3], %s1933_s26 }
  0x2d   : > { %s1937_s5 = scalar_lea.vmem (!%p1880_p8), [#allocation2], %s1553_s27 }
  0x2f   : > { %1780 = dma.done.wait (%p1867_p4), %s187_s28, 1536  }
  0x30   : > { %1782 = vsyncadd (%p1867_p4), %s187_s28, 4294965760 }
  0x31   : > { %1784 = dma.done.wait (%p41_p1), [#allocation6], 9728  }
  0x32   : > { %1786 = vsyncadd (%p41_p1), [#allocation6], 4294957568  ;;  %v1261_v0 = vld [vmem:[#allocation5 + $0xa8] sm:$0xf]  ;;  %v1492_v1 = vld [vmem:[#allocation5 + $0xb0] sm:$0xf0] }
  0x33   : > { %v1357_v2 = vld [vmem:[#allocation5 + $0x168] sm:$0xf]  ;;  %v1262_v3 = vor.u32 %v1492_v1, %v1261_v0  ;;  %v1516_v4 = vld [vmem:[#allocation5 + $0x170] sm:$0xf0]  ;;  %v1249_v9 = vld [vmem:[#allocation5 + $0x90] sm:$0xf] }
  0x34   : > { %v1453_v5 = vld [vmem:[#allocation5 + $0x228] sm:$0xf]  ;;  %v1540_v6 = vld [vmem:[#allocation5 + $0x230] sm:$0xf0]  ;;  %v1358_v7 = vor.u32 %v1516_v4, %v1357_v2  ;;  %v1489_v10 = vld [vmem:[#allocation5 + $0x98] sm:$0xf0] }
  0x35   : > { %v1454_v8 = vor.u32 %v1540_v6, %v1453_v5  ;;  %v1345_v11 = vld [vmem:[#allocation5 + $0x150] sm:$0xf]  ;;  %723 = vmatpush.bf16.msra.mxu0 %v1262_v3  ;;  %v1250_v12 = vor.u32 %v1489_v10, %v1249_v9  ;;  %v1513_v13 = vld [vmem:[#allocation5 + $0x158] sm:$0xf0]  ;;  %v1237_v18 = vld [vmem:[#allocation5 + $0x78] sm:$0xf] }
  0x36   : > { %v1441_v14 = vld [vmem:[#allocation5 + $0x210] sm:$0xf]  ;;  %v1537_v15 = vld [vmem:[#allocation5 + $0x218] sm:$0xf0]  ;;  %742 = vmatpush.bf16.msra.mxu1 %v1358_v7  ;;  %v1346_v16 = vor.u32 %v1513_v13, %v1345_v11  ;;  %v1486_v19 = vld [vmem:[#allocation5 + $0x80] sm:$0xf0] }
  0x37   : > { %761 = vmatpush.bf16.msra.mxu2 %v1454_v8  ;;  %v1442_v17 = vor.u32 %v1537_v15, %v1441_v14  ;;  %v1333_v20 = vld [vmem:[#allocation5 + $0x138] sm:$0xf]  ;;  %v1510_v21 = vld [vmem:[#allocation5 + $0x140] sm:$0xf0]  ;;  %v1238_v24 = vor.u32 %v1486_v19, %v1237_v18  ;;  %v1225_v27 = vld [vmem:[#allocation5 + $0x60] sm:$0xf] }
  0x38   : > { %v1429_v22 = vld [vmem:[#allocation5 + $0x1f8] sm:$0xf]  ;;  %v1534_v23 = vld [vmem:[#allocation5 + $0x200] sm:$0xf0]  ;;  %v1334_v25 = vor.u32 %v1510_v21, %v1333_v20  ;;  %v1483_v28 = vld [vmem:[#allocation5 + $0x68] sm:$0xf0] }
  0x39   : > { %724 = vmatpush.bf16.msra.mxu0 %v1250_v12  ;;  %v1430_v26 = vor.u32 %v1534_v23, %v1429_v22  ;;  %v1321_v29 = vld [vmem:[#allocation5 + $0x120] sm:$0xf]  ;;  %v1507_v30 = vld [vmem:[#allocation5 + $0x128] sm:$0xf0]  ;;  %v1263_v34 = vld [vmem:[#allocation5 + $0xb4] sm:$0xf0]  ;;  %v1226_v35 = vor.u32 %v1483_v28, %v1225_v27 }
  0x3a   : > { %743 = vmatpush.bf16.msra.mxu1 %v1346_v16  ;;  %v1417_v31 = vld [vmem:[#allocation5 + $0x1e0] sm:$0xf]  ;;  %v1531_v32 = vld [vmem:[#allocation5 + $0x1e8] sm:$0xf0]  ;;  %v1213_v36 = vld [vmem:[#allocation5 + $0x48] sm:$0xf]  ;;  %v1322_v39 = vor.u32 %v1507_v30, %v1321_v29 }
  0x3b   : > { %762 = vmatpush.bf16.msra.mxu2 %v1442_v17  ;;  %v1491_v33 = vld [vmem:[#allocation5 + $0xac] sm:$0xf]  ;;  %v1480_v37 = vld [vmem:[#allocation5 + $0x50] sm:$0xf0]  ;;  %v1418_v40 = vor.u32 %v1531_v32, %v1417_v31  ;;  %v1309_v41 = vld [vmem:[#allocation5 + $0x108] sm:$0xf] }
  0x3c   : > { %v1266_v38 = vor.u32 %v1491_v33, %v1263_v34  ;;  %v1504_v42 = vld [vmem:[#allocation5 + $0x110] sm:$0xf0]  ;;  %v1405_v44 = vld [vmem:[#allocation5 + $0x1c8] sm:$0xf]  ;;  %v1251_v46 = vld [vmem:[#allocation5 + $0x9c] sm:$0xf0]  ;;  %v1214_v48 = vor.u32 %v1480_v37, %v1213_v36 }
  0x3d   : > { %725 = vmatpush.bf16.msra.mxu0 %v1238_v24  ;;  %v1488_v43 = vld [vmem:[#allocation5 + $0x94] sm:$0xf]  ;;  %v1485_v49 = vld [vmem:[#allocation5 + $0x7c] sm:$0xf]  ;;  %v1239_v50 = vld [vmem:[#allocation5 + $0x84] sm:$0xf0]  ;;  %v1310_v51 = vor.u32 %v1504_v42, %v1309_v41 }
  0x3e   : > { %744 = vmatpush.bf16.msra.mxu1 %v1334_v25  ;;  %v1528_v45 = vld [vmem:[#allocation5 + $0x1d0] sm:$0xf0]  ;;  %780 = vmatpush.bf16.msra.mxu3 %v1266_v38  ;;  %v1254_v47 = vor.u32 %v1488_v43, %v1251_v46  ;;  %v1201_v53 = vld [vmem:[#allocation5 + $0x30] sm:$0xf]  ;;  %v1477_v54 = vld [vmem:[#allocation5 + $0x38] sm:$0xf0]  ;;  %v1242_v59 = vor.u32 %v1485_v49, %v1239_v50 }
  0x3f   : > { %763 = vmatpush.bf16.msra.mxu2 %v1430_v26  ;;  %v1406_v52 = vor.u32 %v1528_v45, %v1405_v44  ;;  %v1297_v55 = vld [vmem:[#allocation5 + $0xf0] sm:$0xf]  ;;  %v1501_v56 = vld [vmem:[#allocation5 + $0xf8] sm:$0xf0]  ;;  %v1482_v60 = vld [vmem:[#allocation5 + $0x64] sm:$0xf]  ;;  %v1202_v62 = vor.u32 %v1477_v54, %v1201_v53 }
  0x40   : > { %v1393_v57 = vld [vmem:[#allocation5 + $0x1b0] sm:$0xf]  ;;  %v1525_v58 = vld [vmem:[#allocation5 + $0x1b8] sm:$0xf0]  ;;  %v1298_v63 = vor.u32 %v1501_v56, %v1297_v55  ;;  %v1189_v1 = vld [vmem:[#allocation5 + $0x18] sm:$0xf] }
  0x41   : > { %726 = vmatpush.bf16.msra.mxu0 %v1226_v35  ;;  %v1227_v61 = vld [vmem:[#allocation5 + $0x6c] sm:$0xf0]  ;;  %v1394_v0 = vor.u32 %v1525_v58, %v1393_v57  ;;  %v1474_v2 = vld [vmem:[#allocation5 + $0x20] sm:$0xf0]  ;;  %v1285_v3 = vld [vmem:[#allocation5 + $0xd8] sm:$0xf] }
  0x42   : > { %745 = vmatpush.bf16.msra.mxu1 %v1322_v39  ;;  %781 = vmatpush.bf16.msra.mxu3 %v1254_v47  ;;  %v1498_v4 = vld [vmem:[#allocation5 + $0xe0] sm:$0xf0]  ;;  %v1381_v5 = vld [vmem:[#allocation5 + $0x198] sm:$0xf]  ;;  %v1230_v7 = vor.u32 %v1482_v60, %v1227_v61  ;;  %v1479_v8 = vld [vmem:[#allocation5 + $0x4c] sm:$0xf]  ;;  %v1190_v10 = vor.u32 %v1474_v2, %v1189_v1 }
  0x43   : > { %764 = vmatpush.bf16.msra.mxu2 %v1418_v40  ;;  %v1522_v6 = vld [vmem:[#allocation5 + $0x1a0] sm:$0xf0]  ;;  %v1215_v9 = vld [vmem:[#allocation5 + $0x54] sm:$0xf0]  ;;  %v1177_v11 = vld [vmem:[#allocation5] sm:$0xf]  ;;  %v1286_v14 = vor.u32 %v1498_v4, %v1285_v3 }
  0x44   : > { %v1471_v12 = vld [vmem:[#allocation5 + $0x8] sm:$0xf0]  ;;  %v1273_v13 = vld [vmem:[#allocation5 + $0xc0] sm:$0xf]  ;;  %v1382_v15 = vor.u32 %v1522_v6, %v1381_v5  ;;  %v228_v20 = vld [vmem:[%s1937_s5 + $0x18] sm:$0xff]  ;;  %v1218_v22 = vor.u32 %v1479_v8, %v1215_v9  ;;  %vm957_vm0 = vcmask 261120  }
  0x45   : > { %727 = vmatpush.bf16.msra.mxu0 %v1214_v48  ;;  %v1495_v16 = vld [vmem:[#allocation5 + $0xc8] sm:$0xf0]  ;;  %v1369_v17 = vld [vmem:[#allocation5 + $0x180] sm:$0xf]  ;;  %v1359_v23 = vld [vmem:[#allocation5 + $0x174] sm:$0xf0]  ;;  %v1178_v26 = vor.u32 %v1471_v12, %v1177_v11 }
  0x46   : > { %746 = vmatpush.bf16.msra.mxu1 %v1310_v51  ;;  %782 = vmatpush.bf16.msra.mxu3 %v1242_v59  ;;  %v1519_v18 = vld [vmem:[#allocation5 + $0x188] sm:$0xf0]  ;;  %v225_v19 = vld [vmem:[%s1937_s5] sm:$0xff]  ;;  %v1455_v25 = vld [vmem:[#allocation5 + $0x234] sm:$0xf0]  ;;  %v1274_v30 = vor.u32 %v1495_v16, %v1273_v13  ;;  %s1174_s18 = sshll.u32 %s1933_s26, 5 }
  0x47   : > { %765 = vmatpush.bf16.msra.mxu2 %v1406_v52  ;;  %v1515_v21 = vld [vmem:[#allocation5 + $0x16c] sm:$0xf]  ;;  %v1476_v28 = vld [vmem:[#allocation5 + $0x34] sm:$0xf]  ;;  %v1203_v29 = vld [vmem:[#allocation5 + $0x3c] sm:$0xf0]  ;;  %v1370_v31 = vor.u32 %v1519_v18, %v1369_v17  ;;  %v1953_v38 = vpack.c.bf16 %v228_v20, %v225_v19 }
  0x48   : > { %v1539_v24 = vld [vmem:[#allocation5 + $0x22c] sm:$0xf]  ;;  %v229_v32 = vld [vmem:[%s1937_s5 + $0x20] sm:$0xff]  ;;  %v227_v33 = vld [vmem:[%s1937_s5 + $0x10] sm:$0xff]  ;;  %v1362_v35 = vor.u32 %v1515_v21, %v1359_v23  ;;  %v1206_v42 = vor.u32 %v1476_v28, %v1203_v29  ;;  %s223_s23 = scalar_lea.vmem [#allocation8], %s1174_s18  ;;  %s1542_s24 = sshll.u32 %s1858_s16, 5 }
  0x49   : > { %728 = vmatpush.bf16.msra.mxu0 %v1202_v62  ;;  %v226_v27 = vld [vmem:[%s1937_s5 + $0x8] sm:$0xff]  ;;  %v1458_v36 = vor.u32 %v1539_v24, %v1455_v25  ;;  %v1512_v37 = vld [vmem:[#allocation5 + $0x154] sm:$0xf]  ;;  %v1347_v39 = vld [vmem:[#allocation5 + $0x15c] sm:$0xf0]  ;;  %s1069_s4 = scalar_lea.hbm %s2045_s3, %s1542_s24  ;;  %s1070_s6 = sshll.u32 %s223_s23, 4  ;;  %s1071_s6 = int_to_ptr.vmem [resolvable:$true] %s1070_s6 }
  0x4a   : > { %747 = vmatpush.bf16.msra.mxu1 %v1298_v63  ;;  %783 = vmatpush.bf16.msra.mxu3 %v1230_v7  ;;  %v230_v34 = vld [vmem:[%s1937_s5 + $0x28] sm:$0xff]  ;;  %v1536_v40 = vld [vmem:[#allocation5 + $0x214] sm:$0xf]  ;;  %v1443_v41 = vld [vmem:[#allocation5 + $0x21c] sm:$0xf0]  ;;  %v1955_v43 = vpack.c.bf16 %v229_v32, %v226_v27  ;;  %v1350_v47 = vor.u32 %v1512_v37, %v1347_v39  ;;  %s1072_s7 = sshll.u32 %s1069_s4, 4  ;;  %s1073_s7 = int_to_ptr.hbm [resolvable:$true] %s1072_s7 }
  0x4b   : > { %766 = vmatpush.bf16.msra.mxu2 %v1394_v0  ;;  %v1957_v44 = vpack.c.bf16 %v230_v34, %v227_v33  ;;  %v1473_v45 = vld [vmem:[#allocation5 + $0x1c] sm:$0xf]  ;;  %v1191_v46 = vld [vmem:[#allocation5 + $0x24] sm:$0xf0]  ;;  %v1446_v48 = vor.u32 %v1536_v40, %v1443_v41  ;;  %v1470_v54 = vld [vmem:[#allocation5 + $0x4] sm:$0xf] }
  0x4c   : > { %v1509_v49 = vld [vmem:[#allocation5 + $0x13c] sm:$0xf]  ;;  %v1335_v50 = vld [vmem:[#allocation5 + $0x144] sm:$0xf0]  ;;  %v1194_v53 = vor.u32 %v1473_v45, %v1191_v46  ;;  %v1179_v55 = vld [vmem:[#allocation5 + $0xc] sm:$0xf0] }
  0x4d   : > { %729 = vmatpush.bf16.msra.mxu0 %v1190_v10  ;;  %v1533_v51 = vld [vmem:[#allocation5 + $0x1fc] sm:$0xf]  ;;  %v1431_v52 = vld [vmem:[#allocation5 + $0x204] sm:$0xf0]  ;;  %v1338_v56 = vor.u32 %v1509_v49, %v1335_v50  ;;  %v1506_v58 = vld [vmem:[#allocation5 + $0x124] sm:$0xf]  ;;  %v1182_v62 = vor.u32 %v1470_v54, %v1179_v55 }
  0x4e   : > { %748 = vmatpush.bf16.msra.mxu1 %v1286_v14  ;;  %784 = vmatpush.bf16.msra.mxu3 %v1218_v22  ;;  %v1434_v57 = vor.u32 %v1533_v51, %v1431_v52  ;;  %v1323_v59 = vld [vmem:[#allocation5 + $0x12c] sm:$0xf0]  ;;  %v1530_v60 = vld [vmem:[#allocation5 + $0x1e4] sm:$0xf]  ;;  %v1503_v1 = vld [vmem:[#allocation5 + $0x10c] sm:$0xf] }
  0x4f   : > { %767 = vmatpush.bf16.msra.mxu2 %v1382_v15  ;;  %v1419_v61 = vld [vmem:[#allocation5 + $0x1ec] sm:$0xf0]  ;;  %v1326_v63 = vor.u32 %v1506_v58, %v1323_v59  ;;  %v1311_v2 = vld [vmem:[#allocation5 + $0x114] sm:$0xf0]  ;;  %v1527_v3 = vld [vmem:[#allocation5 + $0x1cc] sm:$0xf] }
  0x50   : > { %v1422_v0 = vor.u32 %v1530_v60, %v1419_v61  ;;  %v1407_v4 = vld [vmem:[#allocation5 + $0x1d4] sm:$0xf0]  ;;  %v231_v5 = vld [vmem:[%s1937_s5 + $0x30] sm:$0xff]  ;;  %v234_v6 = vld [vmem:[%s1937_s5 + $0x48] sm:$0xff]  ;;  %v1314_v11 = vor.u32 %v1503_v1, %v1311_v2  ;;  %s1058_s9 = scalar_lea.sflag [#allocation4], %s1933_s26  ;;  %s1749_s16 = sshra.s32 %s1073_s7, 4  ;;  %s1750_s16 = int_to_ptr.hbm [resolvable:$true] %s1749_s16 }
  0x51   : > { %730 = vmatpush.bf16.msra.mxu0 %v1178_v26  ;;  %v232_v7 = vld [vmem:[%s1937_s5 + $0x38] sm:$0xff]  ;;  %v235_v8 = vld [vmem:[%s1937_s5 + $0x50] sm:$0xff]  ;;  %v233_v9 = vld [vmem:[%s1937_s5 + $0x40] sm:$0xff]  ;;  %v1410_v12 = vor.u32 %v1527_v3, %v1407_v4  ;;  %v1968_v14 = vpack.c.bf16 %v234_v6, %v231_v5  ;;  %s1751_s10 = scalar_lea.hbm %s1750_s16, 32  ;;  %s1755_s20 = scalar_lea.hbm %s2045_s3, 64 }
  0x52   : > { %749 = vmatpush.bf16.msra.mxu1 %v1274_v30  ;;  %785 = vmatpush.bf16.msra.mxu3 %v1206_v42  ;;  %v236_v10 = vld [vmem:[%s1937_s5 + $0x58] sm:$0xff]  ;;  %v1500_v13 = vld [vmem:[#allocation5 + $0xf4] sm:$0xf]  ;;  %v1299_v15 = vld [vmem:[#allocation5 + $0xfc] sm:$0xf0]  ;;  %v1971_v18 = vpack.c.bf16 %v235_v8, %v232_v7  ;;  %p1752_p1 = scmp.ne.s32.totalorder %s1750_s16, %s1751_s10  ;;  %p1756_p11 = scmp.lt.s32.totalorder %s1750_s16, %s2045_s3 }
  0x53   : > { %768 = vmatpush.bf16.msra.mxu2 %v1370_v31  ;;  %v1524_v16 = vld [vmem:[#allocation5 + $0x1b4] sm:$0xf]  ;;  %v1395_v17 = vld [vmem:[#allocation5 + $0x1bc] sm:$0xf0]  ;;  %v1973_v19 = vpack.c.bf16 %v236_v10, %v233_v9  ;;  %v1302_v20 = vor.u32 %v1500_v13, %v1299_v15  ;;  %v1497_v22 = vld [vmem:[#allocation5 + $0xdc] sm:$0xf]  ;;  %p1757_p9 = scmp.lt.s32.totalorder %s1755_s20, %s1751_s10 }
  0x54   : > { %731 = vmatmul.bf16.vlgmr.msra.gmra.mxu0 %v1953_v38  ;;  %v1398_v21 = vor.u32 %v1524_v16, %v1395_v17  ;;  %v1287_v23 = vld [vmem:[#allocation5 + $0xe4] sm:$0xf0]  ;;  %v1521_v24 = vld [vmem:[#allocation5 + $0x19c] sm:$0xf]  ;;  %v1494_v28 = vld [vmem:[#allocation5 + $0xc4] sm:$0xf]  ;;  %p1753_p4 = pnand %p1752_p1, %p1906_p5 }
  0x55   : > { %799 = vmatpush.bf16.msrb.mxu0 %v1362_v35  ;;  %750 = vmatmul.bf16.vlgmr.msra.gmra.mxu1 %v1955_v43  ;;  %v1383_v25 = vld [vmem:[#allocation5 + $0x1a4] sm:$0xf0]  ;;  %v1290_v26 = vor.u32 %v1497_v22, %v1287_v23  ;;  %v1275_v29 = vld [vmem:[#allocation5 + $0xcc] sm:$0xf0]  ;;  %v1518_v30 = vld [vmem:[#allocation5 + $0x184] sm:$0xf]  ;;  %p1758_p2 = por %p1757_p9, %p1756_p11 }
  0x56   : > { %818 = vmatpush.bf16.msrb.mxu1 %v1458_v36  ;;  %769 = vmatmul.bf16.vlgmr.msra.gmra.mxu2 %v1957_v44  ;;  %v1386_v27 = vor.u32 %v1521_v24, %v1383_v25  ;;  %v1371_v31 = vld [vmem:[#allocation5 + $0x18c] sm:$0xf0]  ;;  %v1278_v32 = vor.u32 %v1494_v28, %v1275_v29  ;;  %v1517_v58 = vld [vmem:[#allocation5 + $0x178] sm:$0xf0]  ;;  %v1353_v59 = vld [vmem:[#allocation5 + $0x158] sm:$0xf]  ;;  %p1754_p8 = pneg %p1753_p4 }
  0x57   : > { %786 = vmatpush.bf16.msra.mxu3 %v1194_v53  ;;  %v1374_v33 = vor.u32 %v1518_v30, %v1371_v31  ;;  %v1493_v1 = vld [vmem:[#allocation5 + $0xb8] sm:$0xf0]  ;;  %v1341_v2 = vld [vmem:[#allocation5 + $0x140] sm:$0xf]  ;;  %v1511_v3 = vld [vmem:[#allocation5 + $0x148] sm:$0xf0] }
  0x58   : > { %v1329_v13 = vld [vmem:[#allocation5 + $0x128] sm:$0xf]  ;;  %v1508_v15 = vld [vmem:[#allocation5 + $0x130] sm:$0xf0]  ;;  %p1759_p10 = pnand %p1758_p2, %p1754_p8 }
  0x59   : > { %800 = vmatpush.bf16.msrb.mxu0 %v1350_v47  ;;  %v1330_v23 = vor.u32 %v1508_v15, %v1329_v13 }
  0x5a   : > { %819 = vmatpush.bf16.msrb.mxu1 %v1446_v48 }
  0x5b   : > { %787 = vmatpush.bf16.msra.mxu3 %v1182_v62  ;;  %v1514_v62 = vld [vmem:[#allocation5 + $0x160] sm:$0xf0] }
  0x5d   : > { %801 = vmatpush.bf16.msrb.mxu0 %v1338_v56 }
  0x5e   : > { %820 = vmatpush.bf16.msrb.mxu1 %v1434_v57  ;;  %788 = vmatmul.bf16.vlgmr.msra.gmra.mxu3 %v1953_v38  ;;  %v1365_v57 = vld [vmem:[#allocation5 + $0x170] sm:$0xf] }
  0x5f   : > { %v1366_v61 = vor.u32 %v1517_v58, %v1365_v57  ;;  %v1233_v57 = vld [vmem:[#allocation5 + $0x68] sm:$0xf] }
  0x61   : > { %802 = vmatpush.bf16.msrb.mxu0 %v1326_v63  ;;  %v1269_v63 = vld [vmem:[#allocation5 + $0xb0] sm:$0xf]  ;;  %856 = vmatpush.bf16.msrb.mxu3 %v1366_v61  ;;  %v1541_v61 = vld [vmem:[#allocation5 + $0x238] sm:$0xf0] }
  0x62   : > { %821 = vmatpush.bf16.msrb.mxu1 %v1422_v0  ;;  %v1354_v0 = vor.u32 %v1514_v62, %v1353_v59  ;;  %v1270_v4 = vor.u32 %v1493_v1, %v1269_v63  ;;  %v1484_v59 = vld [vmem:[#allocation5 + $0x70] sm:$0xf0] }
  0x64   : > { %736 = vmatmul.bf16.gmra.mxu0 %v1968_v14  ;;  %837 = vmatpush.bf16.msrb.mxu2 %v1270_v4 }
  0x65   : > { %803 = vmatpush.bf16.msrb.mxu0 %v1314_v11  ;;  %755 = vmatmul.bf16.gmra.mxu1 %v1971_v18  ;;  %v1342_v11 = vor.u32 %v1511_v3, %v1341_v2  ;;  %v1449_v2 = vld [vmem:[#allocation5 + $0x218] sm:$0xf]  ;;  %v1538_v3 = vld [vmem:[#allocation5 + $0x220] sm:$0xf0] }
  0x66   : > { %822 = vmatpush.bf16.msrb.mxu1 %v1410_v12  ;;  %774 = vmatmul.bf16.gmra.mxu2 %v1973_v19 }
  0x67   : > { %857 = vmatpush.bf16.msrb.mxu3 %v1354_v0 }
  0x69   : > { %804 = vmatpush.bf16.msrb.mxu0 %v1302_v20 }
  0x6a   : > { %823 = vmatpush.bf16.msrb.mxu1 %v1398_v21 }
  0x6b   : > { %858 = vmatpush.bf16.msrb.mxu3 %v1342_v11  ;;  %v1450_v11 = vor.u32 %v1538_v3, %v1449_v2 }
  0x6d   : > { %805 = vmatpush.bf16.msrb.mxu0 %v1290_v26 }
  0x6e   : > { %824 = vmatpush.bf16.msrb.mxu1 %v1386_v27  ;;  %793 = vmatmul.bf16.gmra.mxu3 %v1968_v14 }
  0x6f   : > { %859 = vmatpush.bf16.msrb.mxu3 %v1330_v23  ;;  %v1478_v23 = vld [vmem:[#allocation5 + $0x40] sm:$0xf0] }
  0x71   : > { %806 = vmatpush.bf16.msrb.mxu0 %v1278_v32  ;;  %v1317_v32 = vld [vmem:[#allocation5 + $0x110] sm:$0xf] }
  0x72   : > { %825 = vmatpush.bf16.msrb.mxu1 %v1374_v33  ;;  %v1505_v33 = vld [vmem:[#allocation5 + $0x118] sm:$0xf0] }
  0x74   : > { %807 = vmatmul.bf16.vlgmr.msrb.gmra.mxu0 %v1955_v43 }
  0x75   : > { %826 = vmatmul.bf16.vlgmr.msrb.gmra.mxu1 %v1957_v44 }
  0x84   : > { %812 = vmatmul.bf16.gmra.mxu0 %v1971_v18 }
  0x85   : > { %831 = vmatmul.bf16.gmra.mxu1 %v1973_v19 }
  0xd1   : > { %v732_v34 = vpop.f32.mrf.mxu0 }
  0xd2   : > { %v751_v35 = vpop.f32.mrf.mxu1 }
  0xd3   : > { %v752_v36 = vadd.f32 %v751_v35, %v732_v34  ;;  %v1257_v34 = vld [vmem:[#allocation5 + $0x98] sm:$0xf] }
  0xd9   : > { %v734_v37 = vpop.f32.mrf.mxu0  ;;  %v770_v54 = vpop.f32.mrf.mxu2 }
  0xda   : > { %v753_v39 = vpop.f32.mrf.mxu1  ;;  %v771_v29 = vadd.f32 %v770_v54, %v752_v36 }
  0xdb   : > { %v754_v24 = vadd.f32 %v753_v39, %v734_v37  ;;  %v1245_v39 = vld [vmem:[#allocation5 + $0x80] sm:$0xf] }
  0xe1   : > { %v737_v40 = vpop.f32.mrf.mxu0  ;;  %v789_v47 = vpop.f32.mrf.mxu3 }
  0xe2   : > { %v756_v41 = vpop.f32.mrf.mxu1  ;;  %v772_v8 = vpop.f32.mrf.mxu2 }
  0xe3   : > { %v1983_v42 = vadd.f32 %v756_v41, %v737_v40  ;;  %v773_v28 = vadd.f32 %v772_v8, %v754_v24  ;;  %v1318_v41 = vor.u32 %v1505_v33, %v1317_v32  ;;  %v1221_v8 = vld [vmem:[#allocation5 + $0x50] sm:$0xf] }
  0xe5   : > { %860 = vmatpush.bf16.msrb.mxu3 %v1318_v41  ;;  %v1529_v41 = vld [vmem:[#allocation5 + $0x1d8] sm:$0xf0] }
  0xe9   : > { %v1985_v45 = vpop.f32.mrf.mxu0  ;;  %v791_v50 = vpop.f32.mrf.mxu3 }
  0xea   : > { %v1987_v46 = vpop.f32.mrf.mxu1  ;;  %v775_v35 = vpop.f32.mrf.mxu2 }
  0xf1   : > { %v808_v48 = vpop.f32.mrf.mxu0  ;;  %v794_v53 = vpop.f32.mrf.mxu3 }
  0xf2   : > { %v827_v49 = vpop.f32.mrf.mxu1  ;;  %v809_v16 = vadd.f32 %v808_v48, %v789_v47  ;;  %v1490_v47 = vld [vmem:[#allocation5 + $0xa0] sm:$0xf0]  ;;  %v1305_v48 = vld [vmem:[#allocation5 + $0xf8] sm:$0xf] }
  0xf3   : > { %v1258_v37 = vor.u32 %v1490_v47, %v1257_v34 }
  0xf4   : > { %v828_v25 = vadd.f32 %v827_v49, %v809_v16  ;;  %v1487_v49 = vld [vmem:[#allocation5 + $0x88] sm:$0xf0]  ;;  %v759_v16 = vadd.f32 %v1987_v46, %v1985_v45  ;;  %v1197_v45 = vld [vmem:[#allocation5 + $0x20] sm:$0xf] }
  0xf5   : > { %838 = vmatpush.bf16.msrb.mxu2 %v1258_v37  ;;  %v1246_v54 = vor.u32 %v1487_v49, %v1245_v39  ;;  %v1475_v46 = vld [vmem:[#allocation5 + $0x28] sm:$0xf0]  ;;  %v1401_v37 = vld [vmem:[#allocation5 + $0x1b8] sm:$0xf]  ;;  %v1526_v39 = vld [vmem:[#allocation5 + $0x1c0] sm:$0xf0] }
  0xf6   : > { %v902_v40 = vpack.c.bf16 %v828_v25, %v828_v25  ;;  %v1198_v34 = vor.u32 %v1475_v46, %v1197_v45  ;;  %v1402_v49 = vor.u32 %v1526_v39, %v1401_v37 }
  0xf8   : > { %v930_v58 = vunpack.c.l.b16 %v902_v40  ;;  %v1413_v40 = vld [vmem:[#allocation5 + $0x1d0] sm:$0xf] }
  0xf9   : > { %v810_v51 = vpop.f32.mrf.mxu0  ;;  %v796_v6 = vpop.f32.mrf.mxu3  ;;  %839 = vmatpush.bf16.msrb.mxu2 %v1246_v54 }
  0xfa   : > { %v829_v52 = vpop.f32.mrf.mxu1  ;;  %v811_v9 = vadd.f32 %v810_v51, %v791_v50  ;;  %v1502_v50 = vld [vmem:[#allocation5 + $0x100] sm:$0xf0]  ;;  %v895_v51 = vmul.f32 0.125, %v773_v28 }
  0xfb   : > { %v1306_v36 = vor.u32 %v1502_v50, %v1305_v48  ;;  %v1414_v48 = vor.u32 %v1529_v41, %v1413_v40 }
  0xfc   : > { %v830_v21 = vadd.f32 %v829_v52, %v811_v9  ;;  %v894_v52 = vmul.f32 0.125, %v771_v29  ;;  %v899_v62 = vpack.c.bf16 %v895_v51, %v895_v51  ;;  %v1481_v9 = vld [vmem:[#allocation5 + $0x58] sm:$0xf0]  ;;  %v1425_v29 = vld [vmem:[#allocation5 + $0x1e8] sm:$0xf] }
  0xfd   : > { %861 = vmatpush.bf16.msrb.mxu3 %v1306_v36  ;;  %v1523_v36 = vld [vmem:[#allocation5 + $0x1a8] sm:$0xf0] }
  0xfe   : > { %v903_v30 = vpack.c.bf16 %v830_v21, %v830_v21  ;;  %v898_v4 = vpack.c.bf16 %v894_v52, %v894_v52  ;;  %v1535_v21 = vld [vmem:[#allocation5 + $0x208] sm:$0xf0] }
 0x100   : > { %v918_v15 = vunpack.c.l.b16 %v898_v4 }
 0x101   : > { %v813_v55 = vpop.f32.mrf.mxu0 }
 0x102   : > { %v832_v56 = vpop.f32.mrf.mxu1  ;;  %v814_v60 = vadd.f32 %v813_v55, %v794_v53  ;;  %v931_v53 = vunpack.c.l.b16 %v903_v30  ;;  %v1293_v55 = vld [vmem:[#allocation5 + $0xe0] sm:$0xf]  ;;  %v1532_v30 = vld [vmem:[#allocation5 + $0x1f0] sm:$0xf0] }
 0x103   : > { %v1426_v32 = vor.u32 %v1532_v30, %v1425_v29 }
 0x104   : > { %v833_v5 = vadd.f32 %v832_v56, %v814_v60  ;;  %v1499_v56 = vld [vmem:[#allocation5 + $0xe8] sm:$0xf0]  ;;  %v1461_v60 = vld [vmem:[#allocation5 + $0x230] sm:$0xf]  ;;  %v934_v0 = vpack.c.b16 %v931_v53, %v930_v58  ;;  %v1389_v53 = vld [vmem:[#allocation5 + $0x1a0] sm:$0xf] }
 0x105   : > { %v1462_v63 = vor.u32 %v1541_v61, %v1461_v60  ;;  %v1294_v1 = vor.u32 %v1499_v56, %v1293_v55  ;;  %v1390_v55 = vor.u32 %v1523_v36, %v1389_v53  ;;  %v1377_v56 = vld [vmem:[#allocation5 + $0x188] sm:$0xf] }
 0x106   : > { %v904_v17 = vpack.c.bf16 %v833_v5, %v833_v5  ;;  %v1234_v5 = vor.u32 %v1484_v59, %v1233_v57  ;;  %v1520_v57 = vld [vmem:[#allocation5 + $0x190] sm:$0xf0] }
 0x107   : > { %875 = vmatpush.bf16.msra.mxu0 %v1462_v63  ;;  %862 = vmatpush.bf16.msrb.mxu3 %v1294_v1  ;;  %v1378_v58 = vor.u32 %v1520_v57, %v1377_v56 }
 0x108   : > { %v932_v26 = vunpack.c.l.b16 %v904_v17  ;;  %840 = vmatpush.bf16.msrb.mxu2 %v1234_v5  ;;  %v1222_v17 = vor.u32 %v1481_v9, %v1221_v8  ;;  %v913_v5 = vld [vmem:[#allocation7 + $0x18] sm:$0xff] }
 0x109   : > { %v815_v7 = vpop.f32.mrf.mxu0 }
 0x10a   : > { %v816_v10 = vadd.f32 %v815_v7, %v796_v6  ;;  %v834_v12 = vpop.f32.mrf.mxu1  ;;  %v1281_v6 = vld [vmem:[#allocation5 + $0xc8] sm:$0xf]  ;;  %v1496_v7 = vld [vmem:[#allocation5 + $0xd0] sm:$0xf0] }
 0x10b   : > { %v1282_v13 = vor.u32 %v1496_v7, %v1281_v6  ;;  %876 = vmatpush.bf16.msra.mxu0 %v1450_v11 }
 0x10c   : > { %v835_v20 = vadd.f32 %v834_v12, %v816_v10  ;;  %v919_v10 = vunpack.c.l.b16 %v899_v62  ;;  %v777_v12 = vpop.f32.mrf.mxu2  ;;  %841 = vmatpush.bf16.msrb.mxu2 %v1222_v17  ;;  %v911_v62 = vld [vmem:[#allocation7 + $0x8] sm:$0xff] }
 0x10d   : > { %v778_v25 = vadd.f32 %v777_v12, %v759_v16  ;;  %863 = vmatpush.bf16.msrb.mxu3 %v1282_v13 }
 0x10e   : > { %v905_v22 = vpack.c.bf16 %v835_v20, %v835_v20  ;;  %v1437_v20 = vld [vmem:[#allocation5 + $0x200] sm:$0xf]  ;;  %v922_v24 = vpack.c.b16 %v919_v10, %v918_v15 }
 0x110   : > { %v933_v27 = vunpack.c.l.b16 %v905_v22  ;;  %v1209_v22 = vld [vmem:[#allocation5 + $0x38] sm:$0xf]  ;;  %864 = vmatmul.bf16.vlgmr.msrb.gmra.mxu3 %v1955_v43 }
 0x111   : > { %v1210_v28 = vor.u32 %v1478_v23, %v1209_v22  ;;  %1543 = vmatpush.bf16.msra.mxu3 %v1462_v63 }
 0x112   : > { %v935_v31 = vpack.c.b16 %v933_v27, %v932_v26  ;;  %v1438_v26 = vor.u32 %v1535_v21, %v1437_v20  ;;  %v776_v27 = vadd.f32 %v775_v35, %v1983_v42  ;;  %v1185_v42 = vld [vmem:[#allocation5 + $0x8] sm:$0xf]  ;;  %v1472_v35 = vld [vmem:[#allocation5 + $0x10] sm:$0xf0] }
 0x113   : > { %842 = vmatpush.bf16.msrb.mxu2 %v1210_v28  ;;  %v1186_v51 = vor.u32 %v1472_v35, %v1185_v42 }
 0x114   : > { %944 = vmatpush.bf16.xpose.msra.mxu1 %v935_v31  ;;  %877 = vmatpush.bf16.msra.mxu0 %v1438_v26  ;;  %v897_v31 = vmul.f32 0.125, %v778_v25  ;;  %v896_v33 = vmul.f32 0.125, %v776_v27 }
 0x115   : > { %1544 = vmatpush.bf16.msra.mxu3 %v1450_v11 }
 0x116   : > { %v901_v47 = vpack.c.bf16 %v897_v31, %v897_v31  ;;  %v900_v50 = vpack.c.bf16 %v896_v33, %v896_v33 }
 0x117   : > { %843 = vmatpush.bf16.msrb.mxu2 %v1198_v34 }
 0x118   : > { %878 = vmatpush.bf16.msra.mxu0 %v1426_v32  ;;  %v921_v43 = vunpack.c.l.b16 %v901_v47  ;;  %v920_v52 = vunpack.c.l.b16 %v900_v50 }
 0x119   : > { %1545 = vmatpush.bf16.msra.mxu3 %v1438_v26 }
 0x11a   : > { %v923_v54 = vpack.c.b16 %v921_v43, %v920_v52 }
 0x11b   : > { %844 = vmatpush.bf16.msrb.mxu2 %v1186_v51 }
 0x11c   : > { %945 = vmatpush.bf16.xpose.msra.mxu1 %v934_v0  ;;  %879 = vmatpush.bf16.msra.mxu0 %v1414_v48 }
 0x11d   : > { %1546 = vmatpush.bf16.msra.mxu3 %v1426_v32 }
 0x11e   : > { %845 = vmatmul.bf16.vlgmr.msrb.gmra.mxu2 %v1953_v38  ;;  %v910_v38 = vld [vmem:[#allocation7] sm:$0xff] }
 0x120   : > { %880 = vmatpush.bf16.msra.mxu0 %v1402_v49  ;;  %869 = vmatmul.bf16.gmra.mxu3 %v1971_v18 }
 0x121   : > { %1547 = vmatpush.bf16.msra.mxu3 %v1414_v48 }
 0x123   : > { %946 = vmatmul.bf16.vlgmr.msra.gmra.mxu1 %v922_v24 }
 0x124   : > { %881 = vmatpush.bf16.msra.mxu0 %v1390_v55 }
 0x125   : > { %1548 = vmatpush.bf16.msra.mxu3 %v1402_v49 }
 0x128   : > { %882 = vmatpush.bf16.msra.mxu0 %v1378_v58 }
 0x129   : > { %1549 = vmatpush.bf16.msra.mxu3 %v1390_v55 }
 0x12b   : > { %883 = vmatmul.bf16.vlgmr.msra.gmra.mxu0 %v1957_v44  ;;  %v912_v44 = vld [vmem:[#allocation7 + $0x10] sm:$0xff] }
 0x12d   : > { %1550 = vmatpush.bf16.msra.mxu3 %v1378_v58 }
 0x12e   : > { %850 = vmatmul.bf16.gmra.mxu2 %v1968_v14 }
 0x130   : > { %888 = vmatmul.bf16.vlgmr.msra.gmra.mxu3 %v1973_v19 }
 0x133   : > { %951 = vmatmul.bf16.gmra.mxu1 %v923_v54 }
 0x193   : > { %v865_v63 = vpop.f32.mrf.mxu3 }
 0x19b   : > { %v867_v3 = vpop.f32.mrf.mxu3 }
 0x1a0   : > { %v947_v59 = vpop.f32.mrf.mxu1 }
 0x1a1   : > { %v948_v60 = vadd.f32 %v947_v59, %v910_v38  ;;  %v846_v4 = vpop.f32.mrf.mxu2 }
 0x1a2   : > { %v866_v17 = vadd.f32 %v865_v63, %v846_v4 }
 0x1a3   : > { %v958_v61 = vsel %vm957_vm0, %v948_v60, -inf  ;;  %v870_v7 = vpop.f32.mrf.mxu3 }
 0x1a4   : > { %959 = vmax.xlane.f32.xlu0 %v958_v61 }
 0x1a8   : > { %v949_v18 = vpop.f32.mrf.mxu1  ;;  %v884_v12 = vpop.f32.mrf.mxu0 }
 0x1a9   : > { %v950_v0 = vadd.f32 %v949_v18, %v911_v62  ;;  %v848_v10 = vpop.f32.mrf.mxu2  ;;  %v885_v23 = vadd.f32 %v884_v12, %v866_v17 }
 0x1aa   : > { %v868_v20 = vadd.f32 %v867_v3, %v848_v10 }
 0x1ab   : > { %v961_v1 = vsel %vm957_vm0, %v950_v0, -inf  ;;  %v872_v11 = vpop.f32.mrf.mxu3  ;;  %v906_v29 = vpack.c.bf16 %v885_v23, %v885_v23 }
 0x1ac   : > { %962 = vmax.xlane.f32.xlu0 %v961_v1 }
 0x1ad   : > { %v1012_v32 = vunpack.c.l.b16 %v906_v29 }
 0x1b0   : > { %v952_v2 = vpop.f32.mrf.mxu1  ;;  %v886_v21 = vpop.f32.mrf.mxu0 }
 0x1b1   : > { %v953_v14 = vadd.f32 %v952_v2, %v912_v44  ;;  %v851_v13 = vpop.f32.mrf.mxu2  ;;  %v887_v25 = vadd.f32 %v886_v21, %v868_v20 }
 0x1b2   : > { %v871_v15 = vadd.f32 %v870_v7, %v851_v13 }
 0x1b3   : > { %v964_v19 = vsel %vm957_vm0, %v953_v14, -inf  ;;  %v889_v16 = vpop.f32.mrf.mxu3  ;;  %v907_v45 = vpack.c.bf16 %v887_v25, %v887_v25 }
 0x1b4   : > { %965 = vmax.xlane.f32.xlu1 %v964_v19  ;;  %v890_v22 = vadd.f32 %v889_v16, %v871_v15 }
 0x1b5   : > { %v1013_v34 = vunpack.c.l.b16 %v907_v45 }
 0x1b6   : > { %v908_v27 = vpack.c.bf16 %v890_v22, %v890_v22 }
 0x1b7   : > { %v1016_v41 = vpack.c.b16 %v1013_v34, %v1012_v32 }
 0x1b8   : > { %v954_v6 = vpop.f32.mrf.mxu1  ;;  %v1014_v46 = vunpack.c.l.b16 %v908_v27 }
 0x1b9   : > { %v955_v8 = vadd.f32 %v954_v6, %v913_v5  ;;  %v853_v24 = vpop.f32.mrf.mxu2 }
 0x1ba   : > { %v873_v26 = vadd.f32 %v872_v11, %v853_v24 }
 0x1bb   : > { %v967_v9 = vsel %vm957_vm0, %v955_v8, -inf  ;;  %v891_v28 = vpop.f32.mrf.mxu3 }
 0x1bc   : > { %968 = vmax.xlane.f32.xlu1 %v967_v9  ;;  %v892_v30 = vadd.f32 %v891_v28, %v873_v26 }
 0x1be   : > { %v909_v31 = vpack.c.bf16 %v892_v30, %v892_v30 }
 0x1c0   : > { %v1015_v33 = vunpack.c.l.b16 %v909_v31 }
 0x1c2   : > { %v1017_v40 = vpack.c.b16 %v1015_v33, %v1014_v46 }
 0x1c4   : > { %1032 = vmatpush.bf16.msra.mxu2 %v1017_v40 }
 0x1c8   : > { %1033 = vmatpush.bf16.msra.mxu2 %v1016_v41 }
 0x217   : > { %v960_v42 = vpop.xlane.xlu0 %959 }
 0x218   : > { %v970_v35 = vsub.f32 %v948_v60, %v960_v42 }
 0x21a   : > { %v974_v47 = vmul.f32 1.442695, %v970_v35 }
 0x21c   : > { %1629 = vpow2.f32 %v974_v47 }
 0x21f   : > { %v963_v48 = vpop.xlane.xlu0 %962 }
 0x220   : > { %v971_v50 = vsub.f32 %v950_v0, %v963_v48 }
 0x222   : > { %v1630_v51 = vpop.eup %1629  ;;  %v976_v37 = vmul.f32 1.442695, %v971_v50 }
 0x223   : > { %v982_v39 = vsel %vm957_vm0, %v1630_v51, 0.0  ;;  %v994_v52 = vpack.c.bf16 %v1630_v51, %v1630_v51 }
 0x224   : > { %1631 = vpow2.f32 %v976_v37  ;;  %983 = vadd.xlane.f32.xlu2 %v982_v39 }
 0x225   : > { %v1002_v56 = vunpack.c.l.b16 %v994_v52 }
 0x227   : > { %v966_v43 = vpop.xlane.xlu1 %965 }
 0x228   : > { %v972_v49 = vsub.f32 %v953_v14, %v966_v43 }
 0x22a   : > { %v1632_v53 = vpop.eup %1631  ;;  %v978_v36 = vmul.f32 1.442695, %v972_v49 }
 0x22b   : > { %v995_v54 = vpack.c.bf16 %v1632_v53, %v1632_v53  ;;  %v985_v55 = vsel %vm957_vm0, %v1632_v53, 0.0 }
 0x22c   : > { %1633 = vpow2.f32 %v978_v36  ;;  %986 = vadd.xlane.f32.xlu2 %v985_v55 }
 0x22d   : > { %v1003_v57 = vunpack.c.l.b16 %v995_v54 }
 0x22f   : > { %v1006_v58 = vpack.c.b16 %v1003_v57, %v1002_v56  ;;  %v969_v38 = vpop.xlane.xlu1 %968 }
 0x230   : > { %v973_v59 = vsub.f32 %v955_v8, %v969_v38 }
 0x231   : > { %1463 = vmatmul.msk.bf16.vlgmr.msra.gmra.mxu2 %vm957_vm0, %v1006_v58 }
 0x232   : > { %v1634_v60 = vpop.eup %1633  ;;  %v980_v61 = vmul.f32 1.442695, %v973_v59 }
 0x233   : > { %v988_v62 = vsel %vm957_vm0, %v1634_v60, 0.0  ;;  %v996_v18 = vpack.c.bf16 %v1634_v60, %v1634_v60 }
 0x234   : > { %1635 = vpow2.f32 %v980_v61  ;;  %989 = vadd.xlane.f32.xlu0 %v988_v62 }
 0x235   : > { %v1004_v44 = vunpack.c.l.b16 %v996_v18 }
 0x23a   : > { %v1636_v63 = vpop.eup %1635 }
 0x23b   : > { %v991_v0 = vsel %vm957_vm0, %v1636_v63, 0.0  ;;  %v997_v1 = vpack.c.bf16 %v1636_v63, %v1636_v63 }
 0x23c   : > { %992 = vadd.xlane.f32.xlu1 %v991_v0 }
 0x23d   : > { %v1005_v2 = vunpack.c.l.b16 %v997_v1 }
 0x23f   : > { %v1007_v3 = vpack.c.b16 %v1005_v2, %v1004_v44 }
 0x241   : > { %1464 = vmatmul.msk.bf16.gmra.mxu2 %vm957_vm0, %v1007_v3 }
 0x297   : > { %v984_v14 = vpop.xlane.xlu2 %983 }
 0x298   : > { %1637 = vrcp.f32 %v984_v14 }
 0x29e   : > { %v1638_v4 = vpop.eup %1637 }
 0x29f   : > { %v987_v19 = vpop.xlane.xlu2 %986 }
 0x2a0   : > { %1639 = vrcp.f32 %v987_v19 }
 0x2a6   : > { %v1640_v8 = vpop.eup %1639 }
 0x2a7   : > { %v990_v7 = vpop.xlane.xlu0 %989 }
 0x2a8   : > { %1641 = vrcp.f32 %v990_v7 }
 0x2ae   : > { %v1642_v12 = vpop.eup %1641 }
 0x2af   : > { %v993_v11 = vpop.xlane.xlu1 %992 }
 0x2b0   : > { %1643 = vrcp.f32 %v993_v11 }
 0x2b4   : > { %v1035_v5 = vpop.f32.mrf.mxu2 }
 0x2b5   : > { %v1049_v6 = vmul.f32 %v1638_v4, %v1035_v5 }
 0x2b6   : > { %v1644_v16 = vpop.eup %1643 }
 0x2b7   : > { %1053 = vst [vmem:[%s223_s23] sm:$0xff] %v1049_v6 }
 0x2bc   : > { %v1037_v9 = vpop.f32.mrf.mxu2 }
 0x2bd   : > { %v1050_v10 = vmul.f32 %v1640_v8, %v1037_v9 }
 0x2bf   : > { %1054 = vst [vmem:[%s223_s23 + $0x8] sm:$0xff] %v1050_v10 }
 0x2c4   : > { %v1040_v13 = vpop.f32.mrf.mxu2 }
 0x2c5   : > { %v1051_v15 = vmul.f32 %v1642_v12, %v1040_v13 }
 0x2c7   : > { %1055 = vst [vmem:[%s223_s23 + $0x10] sm:$0xff] %v1051_v15 }
 0x2cc   : > { %v1042_v17 = vpop.f32.mrf.mxu2 }
 0x2cd   : > { %v1052_v20 = vmul.f32 %v1644_v16, %v1042_v17 }
 0x2cf   : > { %1056 = vst [vmem:[%s223_s23 + $0x18] sm:$0xff] %v1052_v20 }
 0x2d0   : > { %1762 = shalt.err (!%p1759_p10)
}
 0x2d1   : > { %s1815_s26 = smov 128   ;;  %s1816_s28 = smov 8  }
 0x2d2   : > { %1564 = dma.vmem_to_hbm [thread:$0]  (%p1906_p5), %s1071_s6, 512, %s1073_s7, %s1058_s9, %s1815_s26, %s1815_s26, %s1816_s28  }
 0x2d3 PF: > { %s1087_s5 = sand.u32 1, %s1793_s12   ;;  %p2051_p12 = scmp.ge.s32.totalorder %s1805_s15, 2 }
 0x2d4   : > { %s1088_s18 = scalar_lea.sflag [#allocation4], %s1087_s5 }
 0x2d5   : > { %p1578_p13 = pnand %p2051_p12, %p1872_p6 }
 0x2d7   : > { %p1579_p0 = pneg %p1578_p13 }
 0x2d9   : > { %1788 = dma.done.wait (%p1579_p0), %s1088_s18, 512  }
 0x2da   : > { %1790 = vsyncadd (%p1579_p0), %s1088_s18, 4294966784  ;;  %p17_p3 = scmp.ge.s32.totalorder %s1893_s8, 4   ;;  %s2052_s12 = smov %s1797_s13 }
 0x2db   : > { %s2053_s13 = smov %s1801_s14  ;;  %s2054_s14 = smov %s1902_s11 }
 0x2dc   : > { %s2055_s15 = smov %s1893_s8  ;;  %19 = sbr.rel (!%p17_p3) target bundleno = 6 (0x6), region = 85 }
 0x2e1   :  { %1094 = vsyncpa [#allocation3], 1 }
 0x2e2   :  { %1096 = vsyncpa [#allocation3 + $0x1], 1 }
 0x2e3   :  { %1097 = vsyncpa [#allocation6], 1 }
 0x2e4   :  { %1098 = vsyncpa [#allocation4], 1 }
 0x2e5   :  { %1100 = vsyncpa [#allocation4 + $0x1], 1 }

</bundles_post_ra>
